<compile_context>
chip_gen: v7x
topology: tpu7x:2x2x1
jax: 0.10.0
libtpu: 0.0.40
codegen_flags: <defaults>
</compile_context>

<pallas_src>
import functools

import jax
import jax.numpy as jnp
from jax.experimental import pallas as pl
from jax.experimental.pallas import tpu as pltpu


def _round_up(x, m):
    return ((x + m - 1) // m) * m


def _choose_block_b(B, per_batch_bytes, fixed_bytes, budget_bytes):
    """Pick the batch block: as large as the budget allows, legal for the 2-D (Bt, Dp) output
    block (Bt % 8 == 0 or Bt == padded batch), and >= 2 grid steps whenever B allows."""
    avail = max(0, budget_bytes - fixed_bytes)
    cap = max(1, avail // max(1, per_batch_bytes))
    if cap >= B:
        if B <= 8:
            return int(B)                       # one step covering the whole (small) batch
        bt = (((B + 1) // 2) // 8) * 8          # ~2 steps so both v7x TensorCores get work
        return int(max(8, bt))
    if cap >= 8:
        return int((cap // 8) * 8)              # sublane-dense, never exceeds the cap
    # cap < 8 with a multi-step grid: 8 is the smallest legal sublane-dense block; the wrapper
    # raises vmem_limit_bytes from the honest estimate for this case (see TODO at top).
    return int(min(8, B))


def _mhsa_kernel(lens_ref, x_ref, w1_ref, w2m_ref, o_ref, *, inv_t):
    # lens_ref: (Bt, 1)      int32  per-batch valid length (already clipped to T)
    # x_ref:    (Bt, Tp, Dp) bf16   batch block of the input stream
    # w1_ref:   (Dp, H1)     bf16   resident across grid steps
    # w2m_ref:  (H1, 1)      f32    w2.mean(axis=1) folded into the weights
    # o_ref:    (Bt, Dp)     f32    lane-dense 2-D output block
    bt, tp, dp = x_ref.shape
    m_rows = bt * tp

    x = x_ref[...]                                    # (Bt, Tp, Dp) bf16
    x2 = x.reshape(m_rows, dp)                        # layout-free merge (Tp % 16 == 0)

    # Scoring MLP: big-M bf16 MXU matmul + EUP tanh + N=1 matmul (f32 accumulation).
    h = jnp.tanh(jnp.dot(x2, w1_ref[...], preferred_element_type=jnp.float32))   # (M, H1)
    s = jnp.dot(h, w2m_ref[...], preferred_element_type=jnp.float32)             # (M, 1)
    s = s.reshape(bt, tp, 1)

    # Masked softmax over time (axis=1); mask built in-kernel from iota vs lengths.
    lens = lens_ref[...].reshape(bt, 1, 1)                                        # int32
    t_idx = jax.lax.broadcasted_iota(jnp.int32, (bt, tp, 1), 1)
    valid = t_idx < lens                                                          # (Bt, Tp, 1)
    s_m = jnp.where(valid, s, jnp.float32(-1e30))
    m = jnp.max(s_m, axis=1, keepdims=True)                                       # (Bt, 1, 1)
    e = jnp.where(valid, jnp.exp(s_m - m), jnp.float32(0.0))                      # (Bt, Tp, 1)
    denom = jnp.sum(e, axis=1, keepdims=True)
    scale = pl.reciprocal(jnp.maximum(denom, jnp.float32(1e-30)), approx=True)
    p = e * (scale * jnp.float32(inv_t))   # softmax weight with the 1/T mean folded in;
                                           # all-zero row when mask[b] == 0 (PyTorch behavior)

    # Weighted mean over time: bf16 x * f32 p promotes to f32, sublane reduce over Tp.
    o_ref[...] = jnp.sum(x * p, axis=1).astype(o_ref.dtype)


def multi_head_self_attention(x, mask, w1, w2, *,
                              scoring_dtype=jnp.bfloat16,
                              vmem_budget_bytes=None):
    """x: (B, T, D) f32, mask: (B,) int, w1: (D, H1), w2: (H1, H2) -> (B, D) f32."""
    B, T, D = x.shape
    H1 = w1.shape[1]

    # Fold the mean over H2 into the weights (mean is linear).
    w2m = jnp.mean(w2.astype(jnp.float32), axis=1, keepdims=True)                # (H1, 1)

    # bf16 x stream -> sublane tile 16, lane tile 128.
    Tp = _round_up(T, 16)
    Dp = _round_up(D, 128)

    # Generation-aware VMEM sizing (v5e/v6e: 128 MiB, v7x: 64 MiB per TC).
    try:
        vmem_cap = int(pltpu.get_tpu_info().vmem_capacity_bytes)
    except Exception:
        vmem_cap = 64 * 1024 * 1024
    if vmem_budget_bytes is None:
        vmem_budget_bytes = int(0.40 * vmem_cap)

    # Honest per-batch accounting (bytes):
    #   x block (bf16, 2x pipeline buffers)      2 * Tp*Dp*2
    #   f32 (x * p) intermediate                 Tp*Dp*4
    #   scoring intermediates (pre-tanh / h)     2 * Tp*H1*4
    #   lane-padded (Tp,1) softmax temporaries   4 * Tp*128*4
    #   out block (f32, 2x buffers)              2 * Dp*4
    #   lens block (int32, 2x buffers)           2 * 128*4
    per_batch_bytes = (Tp * Dp * (2 * 2 + 4) + 2 * Tp * H1 * 4
                       + 4 * Tp * 128 * 4 + 2 * Dp * 4 + 2 * 128 * 4)
    # Grid-invariant inputs (w1, w2m), still double-buffered by the default pipeline.
    fixed_bytes = 2 * Dp * H1 * 2 + 2 * H1 * 128 * 4

    Bt = _choose_block_b(B, per_batch_bytes, fixed_bytes, vmem_budget_bytes)
    Bp = _round_up(B, Bt)

    est_bytes = fixed_bytes + Bt * per_batch_bytes
    vmem_limit_bytes = max(32 * 1024 * 1024, int(1.5 * est_bytes))
    vmem_limit_bytes = min(vmem_limit_bytes, int(0.90 * vmem_cap))

    # Cast x once to bf16; pad only the dims that actually need it (aligned case is pad-free).
    x_c = x.astype(scoring_dtype)
    if (Bp, Tp, Dp) != (B, T, D):
        x_c = jnp.pad(x_c, ((0, Bp - B), (0, Tp - T), (0, Dp - D)))

    w1_c = w1.astype(scoring_dtype)
    if Dp != D:
        w1_c = jnp.pad(w1_c, ((0, Dp - D), (0, 0)))

    # Per-batch valid lengths; clip so mask[b] > T matches the PyTorch slice behavior.
    lens = jnp.clip(mask.astype(jnp.int32), 0, T).reshape(B, 1)
    if Bp != B:
        lens = jnp.pad(lens, ((0, Bp - B), (0, 0)))     # padded batch rows -> length 0 -> zeros

    kernel = functools.partial(_mhsa_kernel, inv_t=1.0 / T)

    out = pl.pallas_call(
        kernel,
        out_shape=jax.ShapeDtypeStruct((Bp, Dp), jnp.float32),
        grid_spec=pltpu.PrefetchScalarGridSpec(
            num_scalar_prefetch=0,
            grid=(Bp // Bt,),
            in_specs=[
                pl.BlockSpec((Bt, 1), lambda i: (i, 0)),           # valid lengths (int32)
                pl.BlockSpec((Bt, Tp, Dp), lambda i: (i, 0, 0)),   # x block (bf16)
                pl.BlockSpec((Dp, H1), lambda i: (0, 0)),          # w1 (grid-invariant)
                pl.BlockSpec((H1, 1), lambda i: (0, 0)),           # folded w2 mean
            ],
            out_specs=pl.BlockSpec((Bt, Dp), lambda i: (i, 0)),
        ),
        compiler_params=pltpu.CompilerParams(
            dimension_semantics=("parallel",),
            vmem_limit_bytes=vmem_limit_bytes,
        ),
    )(lens, x_c, w1_c, w2m)

    return out[:B, :D]


def _xavier_uniform(key, fan_in, fan_out):
    # torch.nn.init.xavier_uniform_ on a (fan_out, fan_in) Linear weight; stored (in, out).
    limit = (6.0 / (fan_in + fan_out)) ** 0.5
    return jax.random.uniform(key, (fan_in, fan_out), jnp.float32, -limit, limit)


def _reference(x, mask, w1, w2):
    # pure-JAX f32 reference matching the PyTorch module (mask==0 rows -> zero output)
    B, T, D = x.shape
    s = jnp.mean(jnp.tanh(x @ w1) @ w2, axis=-1, keepdims=True)          # (B, T, 1)
    t_idx = jnp.arange(T)[None, :, None]
    valid = t_idx < mask[:, None, None]
    s_m = jnp.where(valid, s, -1e30)
    e = jnp.where(valid, jnp.exp(s_m - jnp.max(s_m, axis=1, keepdims=True)), 0.0)
    p = e / jnp.maximum(jnp.sum(e, axis=1, keepdims=True), 1e-30)
    return jnp.mean(p * x, axis=1)


if __name__ == "__main__":
    B, T = 2, 8
    w1_row, w1_col, w2_col = 32, 16, 4   # D, H1, H2

    key = jax.random.PRNGKey(0)
    k_x, k_w1, k_w2, k_x2 = jax.random.split(key, 4)

    x = jax.random.normal(k_x, (B, T, w1_row), jnp.float32)
    mask = jnp.array([8, 5], dtype=jnp.int32)                 # valid lengths per batch
    w1 = _xavier_uniform(k_w1, w1_row, w1_col)                # (D, H1)  == torch w_1.weight.T
    w2 = _xavier_uniform(k_w2, w1_col, w2_col)                # (H1, H2) == torch w_2.weight.T

    out = jax.block_until_ready(multi_head_self_attention(x, mask, w1, w2))
    ref = _reference(x, mask, w1, w2)
    assert out.shape == (B, w1_row)
    assert jnp.allclose(out, ref, atol=1e-2, rtol=1e-2), float(jnp.max(jnp.abs(out - ref)))

    # Second config: exercises T/D padding, odd batch, and a mask==0 (all-zero weight) row.
    B2, T2, D2 = 3, 5, 40
    x_b = jax.random.normal(k_x2, (B2, T2, D2), jnp.float32)
    mask_b = jnp.array([5, 3, 0], dtype=jnp.int32)
    w1_b = _xavier_uniform(k_w1, D2, w1_col)
    w2_b = _xavier_uniform(k_w2, w1_col, w2_col)
    out_b = jax.block_until_ready(multi_head_self_attention(x_b, mask_b, w1_b, w2_b))
    ref_b = _reference(x_b, mask_b, w1_b, w2_b)
    assert out_b.shape == (B2, D2)
    assert jnp.allclose(out_b, ref_b, atol=1e-2, rtol=1e-2), float(jnp.max(jnp.abs(out_b - ref_b)))

    print("KERNEL_OK")
</pallas_src>

<mosaic_0001>
module attributes {stable_mosaic.version = 11 : i64} {
  func.func @_mhsa_kernel(%arg0: i32, %arg1: memref<2x1xi32, #tpu.memory_space<vmem>>, %arg2: memref<2x16x128xbf16, #tpu.memory_space<vmem>>, %arg3: memref<128x16xbf16, #tpu.memory_space<vmem>>, %arg4: memref<16x1xf32, #tpu.memory_space<vmem>>, %arg5: memref<2x128xf32, #tpu.memory_space<vmem>>) attributes {dimension_semantics = [#tpu.dimension_semantics<parallel>], iteration_bounds = array<i64: 1>, scalar_prefetch = 0 : i64, scratch_operands = 0 : i64, tpu.core_type = #tpu.core_type<tc>, window_params = [{transform_indices = @transform_0, window_bounds = array<i64: 2, 1>}, {transform_indices = @transform_1, window_bounds = array<i64: 2, 16, 128>}, {pipeline_mode = #tpu.pipeline_mode<synchronous>, transform_indices = @transform_2, window_bounds = array<i64: 128, 16>}, {pipeline_mode = #tpu.pipeline_mode<synchronous>, transform_indices = @transform_3, window_bounds = array<i64: 16, 1>}, {transform_indices = @transform_4, window_bounds = array<i64: 2, 128>}]} {
    %c0 = arith.constant 0 : index
    %c0_0 = arith.constant 0 : index
    %c0_1 = arith.constant 0 : index
    %0 = vector.load %arg2[%c0, %c0_0, %c0_1] : memref<2x16x128xbf16, #tpu.memory_space<vmem>>, vector<2x16x128xbf16>
    %1 = vector.shape_cast %0 : vector<2x16x128xbf16> to vector<32x128xbf16>
    %c0_2 = arith.constant 0 : index
    %c0_3 = arith.constant 0 : index
    %2 = vector.load %arg3[%c0_2, %c0_3] : memref<128x16xbf16, #tpu.memory_space<vmem>>, vector<128x16xbf16>
    %cst = arith.constant dense<0.000000e+00> : vector<32x16xf32>
    %3 = tpu.matmul %1, %2, %cst {dimension_numbers = #tpu.dot_dimension_numbers<[1], [0], [0], [1], [0, 0, 1, 1], [], []>} : vector<32x128xbf16>, vector<128x16xbf16>, vector<32x16xf32> -> vector<32x16xf32>
    %4 = math.tanh %3 : vector<32x16xf32>
    %c0_4 = arith.constant 0 : index
    %c0_5 = arith.constant 0 : index
    %5 = vector.load %arg4[%c0_4, %c0_5] : memref<16x1xf32, #tpu.memory_space<vmem>>, vector<16x1xf32>
    %cst_6 = arith.constant dense<0.000000e+00> : vector<32x1xf32>
    %6 = tpu.matmul %4, %5, %cst_6 {dimension_numbers = #tpu.dot_dimension_numbers<[1], [0], [0], [1], [0, 0, 1, 1], [], []>} : vector<32x16xf32>, vector<16x1xf32>, vector<32x1xf32> -> vector<32x1xf32>
    %7 = vector.shape_cast %6 : vector<32x1xf32> to vector<2x16x1xf32>
    %c0_7 = arith.constant 0 : index
    %c0_8 = arith.constant 0 : index
    %8 = vector.load %arg1[%c0_7, %c0_8] : memref<2x1xi32, #tpu.memory_space<vmem>>, vector<2x1xi32>
    %9 = vector.shape_cast %8 : vector<2x1xi32> to vector<2x1x1xi32>
    %10 = tpu.iota {dimensions = array<i32: 1>} : vector<2x16x1xi32>
    %11 = vector.broadcast %9 : vector<2x1x1xi32> to vector<2x16x1xi32>
    %12 = arith.cmpi slt, %10, %11 : vector<2x16x1xi32>
    %cst_9 = arith.constant -1.000000e+30 : f32
    %13 = vector.broadcast %cst_9 : f32 to vector<2x16x1xf32>
    %14 = arith.select %12, %7, %13 : vector<2x16x1xi1>, vector<2x16x1xf32>
    %cst_10 = arith.constant dense<0xFF800000> : vector<2x1xf32>
    %15 = vector.multi_reduction <maximumf>, %14, %cst_10 [1] : vector<2x16x1xf32> to vector<2x1xf32>
    %16 = vector.shape_cast %15 : vector<2x1xf32> to vector<2x1x1xf32>
    %17 = vector.broadcast %16 : vector<2x1x1xf32> to vector<2x16x1xf32>
    %18 = arith.subf %14, %17 : vector<2x16x1xf32>
    %19 = math.exp %18 : vector<2x16x1xf32>
    %cst_11 = arith.constant 0.000000e+00 : f32
    %20 = vector.broadcast %cst_11 : f32 to vector<2x16x1xf32>
    %21 = arith.select %12, %19, %20 : vector<2x16x1xi1>, vector<2x16x1xf32>
    %cst_12 = arith.constant dense<0.000000e+00> : vector<2x1xf32>
    %22 = vector.multi_reduction <add>, %21, %cst_12 [1] : vector<2x16x1xf32> to vector<2x1xf32>
    %23 = vector.shape_cast %22 : vector<2x1xf32> to vector<2x1x1xf32>
    %cst_13 = arith.constant 1.000000e-30 : f32
    %24 = vector.broadcast %cst_13 : f32 to vector<2x1x1xf32>
    %25 = arith.maximumf %23, %24 : vector<2x1x1xf32>
    %26 = tpu.reciprocal %25 {approx = true} : vector<2x1x1xf32> -> vector<2x1x1xf32>
    %cst_14 = arith.constant 1.250000e-01 : f32
    %27 = vector.broadcast %cst_14 : f32 to vector<2x1x1xf32>
    %28 = arith.mulf %26, %27 : vector<2x1x1xf32>
    %29 = vector.broadcast %28 : vector<2x1x1xf32> to vector<2x16x1xf32>
    %30 = arith.mulf %21, %29 : vector<2x16x1xf32>
    %31 = arith.extf %0 : vector<2x16x128xbf16> to vector<2x16x128xf32>
    %32 = vector.broadcast %30 : vector<2x16x1xf32> to vector<2x16x128xf32>
    %33 = arith.mulf %31, %32 : vector<2x16x128xf32>
    %cst_15 = arith.constant dense<0.000000e+00> : vector<2x128xf32>
    %34 = vector.multi_reduction <add>, %33, %cst_15 [1] : vector<2x16x128xf32> to vector<2x128xf32>
    %c0_16 = arith.constant 0 : index
    %c0_17 = arith.constant 0 : index
    %35 = vector.load %arg5[%c0_16, %c0_17] : memref<2x128xf32, #tpu.memory_space<vmem>>, vector<2x128xf32>
    tpu.vector_store %arg5[%c0_16, %c0_17], %34 {strides = array<i32>} : memref<2x128xf32, #tpu.memory_space<vmem>>, vector<2x128xf32>,
    return
  }
  func.func @transform_0(%arg0: i32) -> (i32, i32) {
    %c0_i32 = arith.constant 0 : i32
    %c0_i32_0 = arith.constant 0 : i32
    return %arg0, %c0_i32 : i32, i32
  }
  func.func @transform_1(%arg0: i32) -> (i32, i32, i32) {
    %c0_i32 = arith.constant 0 : i32
    %c0_i32_0 = arith.constant 0 : i32
    %c0_i32_1 = arith.constant 0 : i32
    return %arg0, %c0_i32, %c0_i32_0 : i32, i32, i32
  }
  func.func @transform_2(%arg0: i32) -> (i32, i32) {
    %c0_i32 = arith.constant 0 : i32
    %c0_i32_0 = arith.constant 0 : i32
    %c0_i32_1 = arith.constant 0 : i32
    return %c0_i32, %c0_i32_0 : i32, i32
  }
  func.func @transform_3(%arg0: i32) -> (i32, i32) {
    %c0_i32 = arith.constant 0 : i32
    %c0_i32_0 = arith.constant 0 : i32
    %c0_i32_1 = arith.constant 0 : i32
    return %c0_i32, %c0_i32_0 : i32, i32
  }
  func.func @transform_4(%arg0: i32) -> (i32, i32) {
    %c0_i32 = arith.constant 0 : i32
    %c0_i32_0 = arith.constant 0 : i32
    return %arg0, %c0_i32 : i32, i32
  }
}

</mosaic_0001>

<bundles_post_ra>
// kernel: tpu_custom_call.1
= control target key start
LH: loop header
LB: loop body
LE: loop exit
PB: predicated region body
PF: predicated region fallthrough
CT: control target
= control target key end

     0   :  { %s661_s0 = inlined_call_operand.vmem [shape: s32[2,1], index: 0, kind: input, shape index: {}]   ;;  %s662_s1 = inlined_call_operand.vmem [shape: bf16[2,16,128], index: 1, kind: input, shape index: {}]   ;;  %s663_s2 = inlined_call_operand.vmem [shape: bf16[128,16], index: 2, kind: input, shape index: {}]   ;;  %s664_s3 = inlined_call_operand.vmem [shape: f32[16,1], index: 3, kind: input, shape index: {}]   ;;  %s665_s4 = inlined_call_operand.hbm [shape: f32[2,128], index: 4, kind: output, shape index: {}]  }
   0x1   :  { %v489_v0 = vld [vmem:[%s663_s2] sm:$0xff]   ;;  %v490_v1 = vld [vmem:[%s663_s2 + $0x8] sm:$0xff]   ;;  %v491_v2 = vld [vmem:[%s663_s2 + $0x10] sm:$0xff]  }
   0x2   :  { %450 = vmatprep.subr.bf16.mxu0 %v489_v0  ;;  %v492_v3 = vld [vmem:[%s663_s2 + $0x18] sm:$0xff]   ;;  %v588_v4 = vld [vmem:[%s662_s1] sm:$0xff]  }
   0x3   :  { %451 = vmatpush3.bf16.msra.mxu0 %v489_v0 }
   0x4   :  { %452 = vmatprep.subr.bf16.mxu0 %v490_v1 }
   0x7   :  { %453 = vmatpush3.bf16.msra.mxu0 %v490_v1 }
   0x8   :  { %454 = vmatprep.subr.bf16.mxu0 %v491_v2 }
   0x9   :  { %9 = vsyncpa [#allocation3], 0  ;;  %466 = vmatprep.mubr.bf16.mxu0 %v588_v4  ;;  %v493_v5 = vld [vmem:[%s663_s2 + $0x20] sm:$0xff]   ;;  %v494_v6 = vld [vmem:[%s663_s2 + $0x28] sm:$0xff]   ;;  %vm154_vm0 = vcmask 130048   ;;  %v545_v21 = vmov 0   ;;  %v264_v24 = vlaneseq }
   0xa   :  { %v495_v7 = vld [vmem:[%s663_s2 + $0x30] sm:$0xff]   ;;  %v496_v8 = vld [vmem:[%s663_s2 + $0x38] sm:$0xff]   ;;  %v606_v9 = vld [vmem:[%s662_s1 + $0x8] sm:$0xff]   ;;  %487 = vset.pattern.permute.xlu0 %v545_v21  ;;  %488 = vset.pattern.permute.xlu1 %v545_v21  ;;  %v546_v22 = vmov 1966171168   ;;  %vm294_vm2 = vcmask 7168  }
   0xb   :  { %455 = vmatpush3.bf16.msra.mxu0 %v491_v2  ;;  %v152_v10 = vld [vmem:[%s664_s3] sm:$0xff]  ;;  %v153_v11 = vld [vmem:[%s664_s3 + $0x8] sm:$0xff]  ;;  %v262_v23 = vunpack.c.l.s4 %v546_v22  ;;  %v615_v26 = vshrl.u32 %v264_v24, 7  ;;  %vm401_vm6 = vcmask 1041409  }
   0xc   :  { %456 = vmatprep.subr.bf16.mxu0 %v492_v3  ;;  %v480_v12 = vpack.c.bf16 %v153_v11, %v152_v10  ;;  %v433_v28 = vld.sshfl [vmem:[%s661_s0] sm:$0x11 pattern:$0x75316420]  ;;  %s547_s0 = smov [#allocation2]  }
   0xd   :  { %v263_v25 = vunpack.c.0.s8 %v262_v23  ;;  %v280_v30 = vsub.s32 0, %v615_v26  ;;  %v260_v31 = vcombine.high %v433_v28, %v433_v28  ;;  %v277_v32 = vadd.s32 8, %v615_v26  ;;  %s411_s3 = sshll.u32 %s547_s0, 4  ;;  %s412_s3 = int_to_ptr.vmem [resolvable:$true] %s411_s3 }
   0xe   :  { %481 = vmatprep.subr.bf16.mxu1 %v480_v12  ;;  %s521_s13 = scalar_lea.vmem %s412_s3, 32  ;;  %p526_p1 = scmp.lt.s32.totalorder %s412_s3, %s412_s3 }
   0xf   :  { %457 = vmatpush3.bf16.msra.mxu0 %v492_v3  ;;  %483 = vmatpush3.bf16.msra.mxu1 %v480_v12  ;;  %v266_v27 = vsub.s32 %v263_v25, %v615_v26  ;;  %p522_p0 = scmp.ne.s32.totalorder %s412_s3, %s521_s13  ;;  %p527_p2 = scmp.lt.s32.totalorder %s521_s13, %s521_s13 }
  0x10   :  { %458 = vmatprep.subr.bf16.mxu0 %v493_v5 }
  0x11   :  { %v267_v29 = vrot.slane %v433_v28, %v266_v27  ;;  %v274_v34 = vrot.slane %v260_v31, %v266_v27  ;;  %p528_p3 = por %p527_p2, %p526_p1 }
  0x13   :  { %459 = vmatpush3.bf16.msra.mxu0 %v493_v5  ;;  %v281_v33 = vrot.slane %v267_v29, %v280_v30  ;;  %v285_v35 = vrot.slane %v274_v34, %v280_v30  ;;  %p529_p4 = pnand %p528_p3, %p522_p0 }
  0x14   :  { %460 = vmatprep.subr.bf16.mxu0 %v494_v6 }
  0x15   :  { %vm287_vm1 = vcmp.lt.s32.totalorder %v277_v32, %v281_v33  ;;  %vm286_vm3 = vcmp.lt.s32.totalorder %v615_v26, %v281_v33  ;;  %vm289_vm4 = vcmp.lt.s32.totalorder %v277_v32, %v285_v35  ;;  %vm288_vm5 = vcmp.lt.s32.totalorder %v615_v26, %v285_v35 }
  0x17   :  { %461 = vmatpush3.bf16.msra.mxu0 %v494_v6 }
  0x18   :  { %462 = vmatprep.subr.bf16.mxu0 %v495_v7 }
  0x1b   :  { %463 = vmatpush3.bf16.msra.mxu0 %v495_v7 }
  0x1c   :  { %464 = vmatprep.subr.bf16.mxu0 %v496_v8 }
  0x1f   :  { %465 = vmatpush3.bf16.msra.mxu0 %v496_v8 }
  0x22   :  { %467 = vmatmul.mubr.bf16.vlgmr.msra.gmra.mrb[0].mxu0 %v606_v9 }
  0xf5   :  { %v468_v13 = vpop.f32.mrb[0].mxu0 }
  0xf6   :  { %v133_v14 = vpop.f32.mrb[1].mxu0 }
  0xf7   :  { %501 = vtanh.f32 %v133_v14  ;;  %v469_v15 = vpop.f32.mrb[2].mxu0 }
  0xf8   :  { %v136_v16 = vpop.f32.mrb[3].mxu0 }
  0xf9   :  { %503 = vtanh.f32 %v136_v16 }
  0xfa   :  { %505 = vtanh.f32 %v468_v13 }
  0xfb   :  { %507 = vtanh.f32 %v469_v15 }
 0x101   :  { %v502_v17 = vpop.eup %501 }
 0x102   :  { %474 = vmatprep.mubr.msk.f32.mxu1 %vm154_vm0, %v502_v17 }
 0x103   :  { %v504_v18 = vpop.eup %503 }
 0x104   :  { %v506_v19 = vpop.eup %505  ;;  %475 = vmatmul.mubr.msk.f32.vlgmr.msra.gmra.mrb[0].mxu1 %vm154_vm0, %v504_v18 }
 0x105   :  { %477 = vmatprep.mubr.msk.f32.mxu1 %vm154_vm0, %v506_v19  ;;  %v508_v20 = vpop.eup %507 }
 0x108   :  { %478 = vmatmul.mubr.msk.f32.gmra.mrb[2].mxu1 %vm154_vm0, %v508_v20 }
 0x1d7   :  { %v476_v36 = vpop.f32.mrb[0].mxu1 }
 0x1d8   :  { %v291_v37 = vsel %vm287_vm1, %v476_v36, -1e+30  ;;  %v233_v38 = vpop.f32.mrb[1].mxu1 }
 0x1d9   :  { %v296_v39 = vsel %vm294_vm2, %v291_v37, -inf  ;;  %v290_v40 = vsel %vm286_vm3, %v233_v38, -1e+30 }
 0x1da   :  { %v295_v41 = vsel %vm294_vm2, %v290_v40, -inf }
 0x1db   :  { %v297_v42 = vmax.f32 %v295_v41, %v296_v39  ;;  %v479_v43 = vpop.f32.mrb[2].mxu1 }
 0x1dc   :  { %v293_v44 = vsel %vm289_vm4, %v479_v43, -1e+30  ;;  %v243_v45 = vpop.f32.mrb[3].mxu1 }
 0x1dd   :  { %v298_v46 = vrot.slane %v297_v42, 4  ;;  %v305_v47 = vsel %vm294_vm2, %v293_v44, -inf  ;;  %v292_v48 = vsel %vm288_vm5, %v243_v45, -1e+30  ;;  %v357_v45 = vunpack.c.l.bf16 %v588_v4 }
 0x1de   :  { %v304_v49 = vsel %vm294_vm2, %v292_v48, -inf }
 0x1df   :  { %v299_v50 = vmax.f32 %v297_v42, %v298_v46  ;;  %v306_v51 = vmax.f32 %v304_v49, %v305_v47  ;;  %v358_v46 = vunpack.c.h.bf16 %v588_v4 }
 0x1e1   :  { %v300_v52 = vrot.slane %v299_v50, 2  ;;  %v307_v53 = vrot.slane %v306_v51, 4 }
 0x1e3   :  { %v301_v54 = vmax.f32 %v299_v50, %v300_v52  ;;  %v308_v55 = vmax.f32 %v306_v51, %v307_v53  ;;  %v359_v51 = vunpack.c.l.bf16 %v606_v9  ;;  %v360_v52 = vunpack.c.h.bf16 %v606_v9 }
 0x1e5   :  { %v302_v56 = vrot.slane %v301_v54, 1  ;;  %v309_v57 = vrot.slane %v308_v55, 2 }
 0x1e7   :  { %v303_v58 = vmax.f32 %v301_v54, %v302_v56  ;;  %v310_v59 = vmax.f32 %v308_v55, %v309_v57 }
 0x1e9   :  { %v313_v60 = vsub.f32 %v290_v40, %v303_v58  ;;  %v314_v61 = vsub.f32 %v291_v37, %v303_v58  ;;  %v311_v62 = vrot.slane %v310_v59, 1 }
 0x1eb   :  { %v317_v63 = vmul.f32 1.442695, %v313_v60  ;;  %v319_v0 = vmul.f32 1.442695, %v314_v61  ;;  %v312_v1 = vmax.f32 %v310_v59, %v311_v62 }
 0x1ed   :  { %509 = vpow2.f32 %v317_v63  ;;  %v315_v2 = vsub.f32 %v292_v48, %v312_v1  ;;  %v316_v3 = vsub.f32 %v293_v44, %v312_v1 }
 0x1ee   :  { %511 = vpow2.f32 %v319_v0 }
 0x1ef   :  { %v321_v5 = vmul.f32 1.442695, %v315_v2  ;;  %v323_v6 = vmul.f32 1.442695, %v316_v3 }
 0x1f1   :  { %513 = vpow2.f32 %v321_v5 }
 0x1f2   :  { %515 = vpow2.f32 %v323_v6 }
 0x1f7   :  { %v510_v7 = vpop.eup %509 }
 0x1f8   :  { %v512_v8 = vpop.eup %511  ;;  %v325_v10 = vsel %vm286_vm3, %v510_v7, 0.0 }
 0x1f9   :  { %v326_v11 = vsel %vm287_vm1, %v512_v8, 0.0  ;;  %v329_v12 = vsel %vm294_vm2, %v325_v10, 0.0 }
 0x1fa   :  { %v330_v13 = vsel %vm294_vm2, %v326_v11, 0.0 }
 0x1fb   :  { %v514_v14 = vpop.eup %513  ;;  %v331_v15 = vadd.f32 %v330_v13, %v329_v12 }
 0x1fc   :  { %v516_v16 = vpop.eup %515  ;;  %v327_v17 = vsel %vm288_vm5, %v514_v14, 0.0 }
 0x1fd   :  { %v332_v18 = vrot.slane %v331_v15, 4  ;;  %v328_v19 = vsel %vm289_vm4, %v516_v16, 0.0  ;;  %v338_v20 = vsel %vm294_vm2, %v327_v17, 0.0 }
 0x1fe   :  { %v339_v21 = vsel %vm294_vm2, %v328_v19, 0.0 }
 0x1ff   :  { %v333_v22 = vadd.f32 %v332_v18, %v331_v15  ;;  %v340_v23 = vadd.f32 %v339_v21, %v338_v20 }
 0x201   :  { %v334_v24 = vrot.slane %v333_v22, 2  ;;  %v341_v25 = vrot.slane %v340_v23, 4 }
 0x203   :  { %v335_v27 = vadd.f32 %v334_v24, %v333_v22  ;;  %v342_v28 = vadd.f32 %v341_v25, %v340_v23 }
 0x205   :  { %v336_v29 = vrot.slane %v335_v27, 1  ;;  %v343_v30 = vrot.slane %v342_v28, 2 }
 0x207   :  { %v337_v31 = vadd.f32 %v336_v29, %v335_v27  ;;  %v344_v33 = vadd.f32 %v343_v30, %v342_v28 }
 0x209   :  { %v347_v34 = vmax.f32 %v337_v31, 1e-30  ;;  %v345_v26 = vrot.slane %v344_v33, 1 }
 0x20b   :  { %517 = vrcp.f32 %v347_v34  ;;  %v346_v36 = vadd.f32 %v345_v26, %v344_v33 }
 0x20d   :  { %v348_v32 = vmax.f32 %v346_v36, 1e-30 }
 0x20f   :  { %519 = vrcp.f32 %v348_v32 }
 0x215   :  { %v518_v35 = vpop.eup %517 }
 0x216   :  { %v351_v37 = vmul.f32 0.125, %v518_v35 }
 0x218   :  { %v353_v38 = vmul.f32 %v351_v37, %v325_v10  ;;  %v354_v39 = vmul.f32 %v351_v37, %v326_v11 }
 0x219   :  { %v520_v40 = vpop.eup %519 }
 0x21a   :  { %363 = vperm.xlu0 %487, %v353_v38   ;;  %v352_v41 = vmul.f32 0.125, %v520_v40 }
 0x21c   :  { %v355_v42 = vmul.f32 %v352_v41, %v327_v17  ;;  %v356_v43 = vmul.f32 %v352_v41, %v328_v19 }
 0x21e   :  { %368 = vperm.xlu0 %487, %v354_v39   ;;  %373 = vperm.xlu1 %488, %v355_v42  }
 0x222   :  { %378 = vperm.xlu1 %488, %v356_v43  }
 0x299   :  { %v364_v44 = vpop.permute.xlu0 %363 }
 0x29a   :  { %v381_v49 = vmul.f32 %v364_v44, %v357_v45 }
 0x29d   :  { %v369_v47 = vpop.permute.xlu0 %368  ;;  %v374_v48 = vpop.permute.xlu1 %373 }
 0x29e   :  { %v382_v50 = vmul.f32 %v369_v47, %v358_v46  ;;  %v383_v56 = vmul.f32 %v374_v48, %v359_v51 }
 0x2a0   :  { %v385_v53 = vadd.f32 %v382_v50, %v381_v49 }
 0x2a1   :  { %v379_v54 = vpop.permute.xlu1 %378 }
 0x2a2   :  { %v386_v55 = vrot.slane %v385_v53, 4  ;;  %v384_v57 = vmul.f32 %v379_v54, %v360_v52 }
 0x2a4   :  { %v387_v58 = vadd.f32 %v386_v55, %v385_v53  ;;  %v392_v59 = vadd.f32 %v384_v57, %v383_v56 }
 0x2a6   :  { %v388_v60 = vrot.slane %v387_v58, 2  ;;  %v393_v61 = vrot.slane %v392_v59, 4 }
 0x2a8   :  { %v389_v62 = vadd.f32 %v388_v60, %v387_v58  ;;  %v394_v63 = vadd.f32 %v393_v61, %v392_v59 }
 0x2aa   :  { %v395_v4 = vrot.slane %v394_v63, 2  ;;  %v390_v1 = vrot.slane %v389_v62, 1 }
 0x2ac   :  { %v396_v0 = vadd.f32 %v395_v4, %v394_v63  ;;  %v391_v3 = vadd.f32 %v390_v1, %v389_v62 }
 0x2ae   :  { %v397_v2 = vrot.slane %v396_v0, 1 }
 0x2b0   :  { %v398_v9 = vadd.f32 %v397_v2, %v396_v0 }
 0x2b2   :  { %v402_v5 = vsel %vm401_vm6, %v398_v9, %v391_v3 }
 0x2b3   :  { %404 = vst [vmem:[#allocation2] sm:$0x3] %v402_v5 }
 0x2b4   :  { %532 = shalt.err (!%p529_p4)
}
 0x2b5   :  { %s533_s16 = scalar_lea.hbm %s665_s4, 32 }
 0x2b6   :  { %p534_p5 = scmp.ne.s32.totalorder %s665_s4, %s533_s16  ;;  %p537_p6 = scmp.lt.u32.totalorder %s533_s16, %s665_s4 }
 0x2b8   :  { %p539_p7 = pnand %p537_p6, %p534_p5 }
 0x2ba   :  { %542 = shalt.err (!%p539_p7)
}
 0x2bb   :  { %414 = dma.vmem_to_hbm [thread:$0]  %s412_s3, 32, %s665_s4, [#allocation3]  }
 0x2bc   :  { %543 = dma.done.wait [#allocation3], 32  }
 0x2bd   :  { %544 = vsyncadd [#allocation3], 4294967264 }
 0x2be   :  { %418 = vsyncpa [#allocation3], 1 }

</bundles_post_ra>
